<compile_context>
chip_gen: v7x
topology: tpu7x:2x2x1
jax: 0.10.0
libtpu: 0.0.40
codegen_flags: <defaults>
</compile_context>

<pallas_src>
import jax
import jax.numpy as jnp
from jax.experimental import pallas as pl
from jax.experimental.pallas import tpu as pltpu


# Below this size, launch overhead (~0.35-1 us) dominates any copy: return x.
_SMALL_BYPASS_BYTES = 256 * 1024
# Above this size, fan the copy out into multiple concurrent chunk DMAs.
_CHUNK_THRESHOLD_BYTES = 4 * 1024 * 1024
_MAX_DMA_FANOUT = 4


def _make_identity_copy_kernel(starts, sizes):
    """Build a kernel that copies HBM->HBM in len(starts) concurrent DMAs."""

    def kernel(x_hbm_ref, o_hbm_ref, copy_sems):
        copies = []
        # Start all chunk DMAs back-to-back (keep several in flight), ...
        for c, (s, n) in enumerate(zip(starts, sizes)):
            cp = pltpu.make_async_copy(
                x_hbm_ref.at[pl.ds(s, n)],
                o_hbm_ref.at[pl.ds(s, n)],
                copy_sems.at[c],
            )
            cp.start()
            copies.append(cp)
        # ... then wait on all of them.
        for cp in copies:
            cp.wait()

    return kernel


def _nbytes(x) -> int:
    return int(x.size) * jnp.dtype(x.dtype).itemsize


def _identity_copy_impl(x: jax.Array) -> jax.Array:
    """Always launches the Pallas HBM->HBM copy kernel."""
    orig_shape = x.shape
    xin = x.reshape(1) if x.ndim == 0 else x

    rows = xin.shape[0]
    nbytes = _nbytes(xin)

    # Choose DMA fan-out: single DMA for small copies; up to 4 concurrent
    # chunk DMAs along the leading axis for multi-MiB copies.
    if nbytes >= _CHUNK_THRESHOLD_BYTES and rows >= 2:
        want = min(_MAX_DMA_FANOUT, rows)
    else:
        want = 1
    chunk_rows = (rows + want - 1) // want
    starts = tuple(range(0, rows, chunk_rows))
    sizes = tuple(min(chunk_rows, rows - s) for s in starts)
    num_chunks = len(starts)

    out = pl.pallas_call(
        _make_identity_copy_kernel(starts, sizes),
        out_shape=jax.ShapeDtypeStruct(xin.shape, xin.dtype),
        in_specs=[pl.BlockSpec(memory_space=pl.ANY)],   # raw HBM ref, no auto-DMA
        out_specs=pl.BlockSpec(memory_space=pl.ANY),    # raw HBM ref, no auto-DMA
        scratch_shapes=[pltpu.SemaphoreType.DMA((num_chunks,))],
        cost_estimate=pl.CostEstimate(
            flops=0, transcendentals=0, bytes_accessed=2 * nbytes),
    )(xin)

    return out.reshape(orig_shape)


# Custom VJP: straight-through gradient (g -> g), since pallas_call has no
# automatic differentiation rule.
@jax.custom_vjp
def _identity_copy(x: jax.Array) -> jax.Array:
    return _identity_copy_impl(x)


def _identity_copy_fwd(x):
    return _identity_copy_impl(x), None


def _identity_copy_bwd(_, g):
    return (g,)


_identity_copy.defvjp(_identity_copy_fwd, _identity_copy_bwd)


def straight_through(x: jax.Array, *,
                     small_bypass_bytes: int = _SMALL_BYPASS_BYTES) -> jax.Array:
    """Pallas equivalent of StraightThrough.forward: returns input unchanged.

    Small / empty / 0-d tensors take the exact `return x` fast path (zero HBM
    traffic); larger tensors go through the HBM->HBM copy kernel. Pass
    small_bypass_bytes=0 to force the kernel path.
    """
    if x.size == 0 or x.ndim == 0 or _nbytes(x) <= small_bypass_bytes:
        return x
    return _identity_copy(x)


if __name__ == "__main__":
    key = jax.random.PRNGKey(0)
    # Small NCHW input consistent with a conv-style module: batch=2, C=4, H=W=16.
    x = jax.random.normal(key, (2, 4, 16, 16), dtype=jnp.float32)

    # Force the Pallas kernel path once (default wrapper would bypass the
    # kernel for a tensor this small, since identity needs no HBM traffic).
    y = straight_through(x, small_bypass_bytes=0)
    jax.block_until_ready(y)
    assert y.shape == x.shape, (y.shape, x.shape)
    assert y.dtype == x.dtype, (y.dtype, x.dtype)
    assert bool(jnp.all(y == x)), "identity mismatch (kernel path)"

    # Default fast path.
    y_fast = straight_through(x)
    jax.block_until_ready(y_fast)
    assert bool(jnp.all(y_fast == x)), "identity mismatch (fast path)"

    # Straight-through gradient sanity check (custom_vjp: g -> g).
    g = jax.grad(lambda t: jnp.sum(straight_through(t, small_bypass_bytes=0)))(x)
    jax.block_until_ready(g)
    assert bool(jnp.all(g == jnp.ones_like(x))), "straight-through grad mismatch"

    print("KERNEL_OK")
</pallas_src>

<mosaic_0001>
module attributes {stable_mosaic.version = 11 : i64} {
  func.func @kernel(%arg0: memref<2x4x16x16xf32, #tpu.memory_space<any>>, %arg1: memref<2x4x16x16xf32, #tpu.memory_space<any>>, %arg2: memref<1x!tpu.dma_semaphore, #tpu.memory_space<semaphore_mem>>) attributes {dimension_semantics = [], scalar_prefetch = 0 : i64, scratch_operands = 1 : i64, tpu.core_type = #tpu.core_type<tc>} {
    %c0_i32 = arith.constant 0 : i32
    %c0_i32_0 = arith.constant 0 : i32
    %c0_i32_1 = arith.constant 0 : i32
    %c0_i32_2 = arith.constant 0 : i32
    %c0_i32_3 = arith.constant 0 : i32
    %0 = tpu.memref_slice %arg0[%c0_i32_0, %c0_i32_1, %c0_i32_2, %c0_i32_3] : memref<2x4x16x16xf32, #tpu.memory_space<any>> -> memref<2x4x16x16xf32, #tpu.memory_space<any>>
    %c0_i32_4 = arith.constant 0 : i32
    %c0_i32_5 = arith.constant 0 : i32
    %c0_i32_6 = arith.constant 0 : i32
    %c0_i32_7 = arith.constant 0 : i32
    %1 = tpu.memref_slice %arg1[%c0_i32_4, %c0_i32_5, %c0_i32_6, %c0_i32_7] : memref<2x4x16x16xf32, #tpu.memory_space<any>> -> memref<2x4x16x16xf32, #tpu.memory_space<any>>
    %2 = tpu.memref_slice %arg2[%c0_i32] : memref<1x!tpu.dma_semaphore, #tpu.memory_space<semaphore_mem>> -> memref<1x!tpu.dma_semaphore, #tpu.memory_space<semaphore_mem>>
    %3 = tpu.memref_squeeze %2 : memref<1x!tpu.dma_semaphore, #tpu.memory_space<semaphore_mem>> -> memref<!tpu.dma_semaphore, #tpu.memory_space<semaphore_mem>>
    tpu.enqueue_dma source(%0 : memref<2x4x16x16xf32, #tpu.memory_space<any>>) target(%1 : memref<2x4x16x16xf32, #tpu.memory_space<any>>) target_semaphore(%3 : memref<!tpu.dma_semaphore, #tpu.memory_space<semaphore_mem>>)
    %c0_i32_8 = arith.constant 0 : i32
    %c0_i32_9 = arith.constant 0 : i32
    %c0_i32_10 = arith.constant 0 : i32
    %c0_i32_11 = arith.constant 0 : i32
    %c0_i32_12 = arith.constant 0 : i32
    %4 = tpu.memref_slice %arg0[%c0_i32_9, %c0_i32_10, %c0_i32_11, %c0_i32_12] : memref<2x4x16x16xf32, #tpu.memory_space<any>> -> memref<2x4x16x16xf32, #tpu.memory_space<any>>
    %c0_i32_13 = arith.constant 0 : i32
    %c0_i32_14 = arith.constant 0 : i32
    %c0_i32_15 = arith.constant 0 : i32
    %c0_i32_16 = arith.constant 0 : i32
    %5 = tpu.memref_slice %arg1[%c0_i32_13, %c0_i32_14, %c0_i32_15, %c0_i32_16] : memref<2x4x16x16xf32, #tpu.memory_space<any>> -> memref<2x4x16x16xf32, #tpu.memory_space<any>>
    %6 = tpu.memref_slice %arg2[%c0_i32_8] : memref<1x!tpu.dma_semaphore, #tpu.memory_space<semaphore_mem>> -> memref<1x!tpu.dma_semaphore, #tpu.memory_space<semaphore_mem>>
    %7 = tpu.memref_squeeze %6 : memref<1x!tpu.dma_semaphore, #tpu.memory_space<semaphore_mem>> -> memref<!tpu.dma_semaphore, #tpu.memory_space<semaphore_mem>>
    tpu.wait_dma2 semaphore(%7 : memref<!tpu.dma_semaphore, #tpu.memory_space<semaphore_mem>>) src(%4 : memref<2x4x16x16xf32, #tpu.memory_space<any>>) dst(%5 : memref<2x4x16x16xf32, #tpu.memory_space<any>>)
    return
  }
}

</mosaic_0001>

<bundles_post_ra>
// kernel: tpu_custom_call.1
= control target key start
LH: loop header
LB: loop body
LE: loop exit
PB: predicated region body
PF: predicated region fallthrough
CT: control target
= control target key end

     0   :  { %s36_s6 = smov [#allocation2]   ;;  %s37_s7 = smov [#allocation3]   ;;  %s55_s0 = inlined_call_operand.hbm [shape: f32[2,4,16,16], index: 0, kind: input, shape index: {}]   ;;  %s56_s1 = inlined_call_operand.hbm [shape: f32[2,4,16,16], index: 1, kind: output, shape index: {}]  }
   0x1   :  { %s38_s8 = smov 0  }
   0x2   :  { %18 = dma.general %s55_s0, 2048, %s56_s1, %s36_s6, %s37_s7, [#allocation4], %s38_s8, 0  }
   0x3   :  { %34 = dma.done.wait [#allocation2], 2048 }
   0x4   :  { %35 = vsyncadd [#allocation2], 4294965248 }
   0x5   :  { %24 = vsyncmov [#allocation2] }
   0x8   :  { %s25_s13 = vpop.sfrf %24 }
   0x9   :  { %p30_p0 = scmp.ne.s32.totalorder %s25_s13, 0 }
   0xb   :  { %29 = shalt.err (%p30_p0)  }

</bundles_post_ra>
